<compile_context>
chip_gen: v7x
topology: tpu7x:2x2x1
jax: 0.10.0
libtpu: 0.0.40
codegen_flags: <defaults>
</compile_context>

<pallas_src>
import functools

import jax
import jax.numpy as jnp
from jax import lax
from jax.experimental import pallas as pl
from jax.experimental.pallas import tpu as pltpu

LANES = 128        # TPU lane width (last dim of every block)
CHUNK_ROWS = 512   # in-kernel compute sub-chunk: 512 x 128 f32 = 256 KiB
TARGET_GRID = 4    # keep >= 4 grid steps so v7x can shard over its 2 TCs

# pltpu.roll follows the jnp.roll convention: roll(x, s, ax)[..., j] == x[..., (j - s) % n]
_SHIFT_NEXT = LANES - 1   # rolled[:, j] == x[:, (j + 1) % LANES]
_SHIFT_PREV = 1           # rolled[:, j] == x[:, (j - 1) % LANES]


@functools.lru_cache(maxsize=None)
def _hw_config():
    """Returns (max_block_rows, vmem_limit_bytes), chosen per chip generation."""
    max_block_rows, vmem_limit = 8192, 48 * 1024 * 1024      # v7x-safe default (64 MiB VMEM)
    try:
        vmem = int(pltpu.get_tpu_info().vmem_capacity_bytes)
        if vmem >= 96 * 1024 * 1024:                          # v5e / v6e: 128 MiB VMEM
            max_block_rows, vmem_limit = 16384, 64 * 1024 * 1024
    except Exception:
        pass
    return max_block_rows, vmem_limit


def _choose_block_rows(rows: int, max_block_rows: int) -> int:
    if rows <= CHUNK_ROWS:
        # Single block equal to the full array dims (always a legal block shape).
        return rows
    per_step = -(-rows // TARGET_GRID)                        # aim for >= TARGET_GRID steps
    per_step = -(-per_step // CHUNK_ROWS) * CHUNK_ROWS        # multiple of CHUNK_ROWS (and 8)
    return max(CHUNK_ROWS, min(max_block_rows, per_step))


def _make_kernel(block_rows: int):
    chunk = block_rows if block_rows <= CHUNK_ROWS else CHUNK_ROWS
    n_chunks = block_rows // chunk
    assert block_rows == n_chunks * chunk

    def kernel(coef_ref, x_ref, o_ref):
        # coef_ref: VMEM (3, 128)  row0 = a_next, row1 = a_prev, row2 = bias
        # x_ref / o_ref: VMEM (block_rows, 128), flat interleaved [x, y, x, y, ...]
        a_n = coef_ref[0:1, :]
        a_p = coef_ref[1:2, :]
        b = coef_ref[2:3, :]

        def compute(r0):
            xx = x_ref[pl.ds(r0, chunk), :]
            nxt = pltpu.roll(xx, _SHIFT_NEXT, 1)   # lane j -> lane j+1 (same point's y on even lanes)
            prv = pltpu.roll(xx, _SHIFT_PREV, 1)   # lane j -> lane j-1 (same point's x on odd lanes)
            # even lanes (x slots): a_n = A, a_p = 0  -> A*y + B  (dx/dt)
            # odd  lanes (y slots): a_n = 0, a_p = C  -> C*x + D  (dy/dt)
            o_ref[pl.ds(r0, chunk), :] = a_n * nxt + a_p * prv + b

        if n_chunks == 1:
            compute(0)
        else:
            def body(c, carry):
                compute(pl.multiple_of(c * chunk, chunk))
                return carry
            lax.fori_loop(0, n_chunks, body, 0, unroll=(n_chunks <= 16))

    return kernel


def two_vortecs_forward(x, params):
    """x: (N, 2) float32 points; params: (8,) float32
    [x01, y01, x02, y02, logyscale1, scale1, logyscale2, scale2] -> (N, 2)."""
    assert x.ndim == 2 and x.shape[1] == 2, "x must be (N, 2)"
    assert params.shape == (8,), "params must have exactly 8 entries"
    x = x.astype(jnp.float32)
    params = params.astype(jnp.float32)
    N = x.shape[0]

    # Fold the 8 parameters into 4 affine coefficients (removes exp and most
    # of the per-element arithmetic from the kernel).
    x01, y01, x02, y02 = params[0], params[1], params[2], params[3]
    logys1, scale1, logys2, scale2 = params[4], params[5], params[6], params[7]
    e1 = jnp.exp(-logys1)
    e2 = jnp.exp(-logys2)
    A = scale1 * e1 + scale2 * e2
    B = -(scale1 * e1 * y01 + scale2 * e2 * y02)
    C = -(scale1 + scale2)
    D = scale1 * x01 + scale2 * x02

    # Per-lane coefficient rows for the interleaved layout: even lanes hold
    # x-coords (output dx/dt), odd lanes hold y-coords (output dy/dt).
    lane = jnp.arange(LANES)
    even = (lane % 2) == 0
    coef = jnp.stack([
        jnp.where(even, A, 0.0),   # multiplies the "next" lane  (same point's y)
        jnp.where(even, 0.0, C),   # multiplies the "prev" lane  (same point's x)
        jnp.where(even, B, D),     # bias
    ]).astype(jnp.float32)         # (3, 128)

    # Lane-dense (rows, 128) view of the contiguous interleaved point buffer.
    L = 2 * N
    padded = (L % LANES) != 0
    rows = -(-L // LANES)
    if not padded:
        x2d = x.reshape(rows, LANES)          # pure reshape of the contiguous buffer
    else:
        # Rare path (2N not a multiple of 128).  The bulk-alignment case above
        # needs no pad or slice: the partial last *block* is masked by Pallas.
        # TODO(synk): mask the sub-row ragged tail in-kernel (or expose a flat
        # (2N,) API) so even this small-N pad copy disappears.
        flat = jnp.pad(x.reshape(-1), (0, rows * LANES - L))
        x2d = flat.reshape(rows, LANES)

    max_block_rows, vmem_limit = _hw_config()
    block_rows = _choose_block_rows(rows, max_block_rows)
    grid = -(-rows // block_rows)             # partial last block handled by Pallas masking

    out2d = pl.pallas_call(
        _make_kernel(block_rows),
        out_shape=jax.ShapeDtypeStruct((rows, LANES), jnp.float32),
        grid=(grid,),
        in_specs=[
            pl.BlockSpec((3, LANES), lambda i: (0, 0)),           # coefficients (resident)
            pl.BlockSpec((block_rows, LANES), lambda i: (i, 0)),  # point block
        ],
        out_specs=pl.BlockSpec((block_rows, LANES), lambda i: (i, 0)),
        compiler_params=pltpu.CompilerParams(
            dimension_semantics=("parallel",),
            vmem_limit_bytes=vmem_limit,
            allow_input_fusion=[False, True],
        ),
        cost_estimate=pl.CostEstimate(
            flops=8 * N, transcendentals=0, bytes_accessed=16 * N),
    )(coef, x2d)

    if padded:
        return out2d.reshape(-1)[:L].reshape(N, 2)
    return out2d.reshape(N, 2)


def two_vortecs_reference(x, params):
    """Direct (unfused) translation of the PyTorch forward, for checking."""
    x01, y01, x02, y02, logys1, scale1, logys2, scale2 = [params[i] for i in range(8)]
    xx1 = x[:, 0] - x01
    y1 = (x[:, 1] - y01) * jnp.exp(-logys1)
    xx2 = x[:, 0] - x02
    y2 = (x[:, 1] - y02) * jnp.exp(-logys2)
    v1 = jnp.stack([y1, -xx1], axis=1)
    v2 = jnp.stack([y2, -xx2], axis=1)
    return scale1 * v1 + scale2 * v2


if __name__ == "__main__":
    # two_vortecs.__init__ sets scale1 = scale2 = 0 (output identically zero),
    # so deterministic nonzero parameter values are used to exercise the math.
    params = jnp.array([-0.5, 0.0, 0.5, 0.0, 0.1, 0.7, -0.2, 1.3],
                       dtype=jnp.float32)

    key = jax.random.PRNGKey(0)
    k_small, k_large = jax.random.split(key)

    fwd = jax.jit(two_vortecs_forward)

    # Small shape: exercises the (rare) padded sub-row tail path, grid of 1.
    x_small = jax.random.normal(k_small, (200, 2), dtype=jnp.float32)
    # Larger shape: pad-free path with a 4-step parallel grid and a partial
    # (masked) last block (3125 rows of 128 lanes, 1024-row blocks).
    x_large = jax.random.normal(k_large, (200_000, 2), dtype=jnp.float32)

    for xin in (x_small, x_large):
        out = jax.block_until_ready(fwd(xin, params))
        ref = two_vortecs_reference(xin, params)
        assert out.shape == xin.shape
        assert jnp.allclose(out, ref, atol=1e-5, rtol=1e-5), \
            f"mismatch vs reference for N={xin.shape[0]}"

    print("KERNEL_OK")
</pallas_src>

<mosaic_0001>
module attributes {stable_mosaic.version = 11 : i64} {
  func.func @kernel(%arg0: i32, %arg1: memref<3x128xf32, #tpu.memory_space<vmem>>, %arg2: memref<4x128xf32, #tpu.memory_space<vmem>>, %arg3: memref<4x128xf32, #tpu.memory_space<vmem>>) attributes {dimension_semantics = [#tpu.dimension_semantics<parallel>], iteration_bounds = array<i64: 1>, scalar_prefetch = 0 : i64, scratch_operands = 0 : i64, tpu.core_type = #tpu.core_type<tc>, window_params = [{pipeline_mode = #tpu.pipeline_mode<synchronous>, transform_indices = @transform_0, window_bounds = array<i64: 3, 128>}, {transform_indices = @transform_1, window_bounds = array<i64: 4, 128>}, {transform_indices = @transform_2, window_bounds = array<i64: 4, 128>}]} {
    %c0 = arith.constant 0 : index
    %c0_0 = arith.constant 0 : index
    %0 = vector.load %arg1[%c0, %c0_0] : memref<3x128xf32, #tpu.memory_space<vmem>>, vector<1x128xf32>
    %c1 = arith.constant 1 : index
    %c0_1 = arith.constant 0 : index
    %1 = vector.load %arg1[%c1, %c0_1] : memref<3x128xf32, #tpu.memory_space<vmem>>, vector<1x128xf32>
    %c2 = arith.constant 2 : index
    %c0_2 = arith.constant 0 : index
    %2 = vector.load %arg1[%c2, %c0_2] : memref<3x128xf32, #tpu.memory_space<vmem>>, vector<1x128xf32>
    %c0_3 = arith.constant 0 : index
    %c0_4 = arith.constant 0 : index
    %3 = vector.load %arg2[%c0_3, %c0_4] : memref<4x128xf32, #tpu.memory_space<vmem>>, vector<4x128xf32>
    %c127_i32 = arith.constant 127 : i32
    %4 = tpu.dynamic_rotate %3 by %c127_i32 dim 1 : vector<4x128xf32>, i32 -> vector<4x128xf32>
    %c1_i32 = arith.constant 1 : i32
    %5 = tpu.dynamic_rotate %3 by %c1_i32 dim 1 : vector<4x128xf32>, i32 -> vector<4x128xf32>
    %6 = vector.broadcast %0 : vector<1x128xf32> to vector<4x128xf32>
    %7 = arith.mulf %6, %4 : vector<4x128xf32>
    %8 = vector.broadcast %1 : vector<1x128xf32> to vector<4x128xf32>
    %9 = arith.mulf %8, %5 : vector<4x128xf32>
    %10 = arith.addf %7, %9 : vector<4x128xf32>
    %11 = vector.broadcast %2 : vector<1x128xf32> to vector<4x128xf32>
    %12 = arith.addf %10, %11 : vector<4x128xf32>
    %c0_5 = arith.constant 0 : index
    %c0_6 = arith.constant 0 : index
    %13 = vector.load %arg3[%c0_5, %c0_6] : memref<4x128xf32, #tpu.memory_space<vmem>>, vector<4x128xf32>
    tpu.vector_store %arg3[%c0_5, %c0_6], %12 {strides = array<i32>} : memref<4x128xf32, #tpu.memory_space<vmem>>, vector<4x128xf32>,
    return
  }
  func.func @transform_0(%arg0: i32) -> (i32, i32) {
    %c0_i32 = arith.constant 0 : i32
    %c0_i32_0 = arith.constant 0 : i32
    %c0_i32_1 = arith.constant 0 : i32
    return %c0_i32, %c0_i32_0 : i32, i32
  }
  func.func @transform_1(%arg0: i32) -> (i32, i32) {
    %c0_i32 = arith.constant 0 : i32
    %c0_i32_0 = arith.constant 0 : i32
    return %arg0, %c0_i32 : i32, i32
  }
  func.func @transform_2(%arg0: i32) -> (i32, i32) {
    %c0_i32 = arith.constant 0 : i32
    %c0_i32_0 = arith.constant 0 : i32
    return %arg0, %c0_i32 : i32, i32
  }
}

</mosaic_0001>

<bundles_post_ra>
// kernel: two_vortecs_forward.2
= control target key start
LH: loop header
LB: loop body
LE: loop exit
PB: predicated region body
PF: predicated region fallthrough
CT: control target
= control target key end

     0   :  { %s94_s0 = inlined_call_operand.vmem [shape: f32[3,128], index: 0, kind: input, shape index: {}]   ;;  %s95_s1 = inlined_call_operand.vmem [shape: f32[400], index: 1, kind: input, shape index: {}]   ;;  %s96_s2 = inlined_call_operand.<no memory space> [shape: f32[], index: 2, kind: input, shape index: {}]   ;;  %s97_s3 = inlined_call_operand.vmem [shape: f32[4,128], index: 3, kind: output, shape index: {}]  }
   0x1   :  { %v8_v0 = vstv %s96_s2 }
   0x2   :  { %v13_v1 = vld [vmem:[%s95_s1] sm:$0xf]  ;;  %v14_v2 = vlaneseq  ;;  %s54_s16 = smov 127   ;;  %s55_s17 = smov 1  }
   0x3   :  { %v49_v6 = vld [vmem:[%s94_s0] ss:$0 sm:$0xff]  ;;  %v50_v7 = vld [vmem:[%s94_s0 + $0x1] ss:$0 sm:$0xff]  ;;  %v51_v11 = vld [vmem:[%s94_s0 + $0x2] ss:$0 sm:$0xff] }
   0x4   :  { %vm16_vm0 = vcmp.lt.s32.totalorder %v14_v2, 400 }
   0x5   :  { %v17_v3 = vsel %vm16_vm0, %v13_v1, %v8_v0 }
   0x6   :  { %19 = vst [vmem:[#allocation7] sm:$0xf] %v17_v3 }
   0xd   :  { %v23_v4 = vld [vmem:[#allocation7] sm:$0xf] }
   0xe   :  { %24 = vrot.lane.b32.xlu0 %v23_v4, %s54_s16 }
  0x12   :  { %26 = vrot.lane.b32.xlu0 %v23_v4, %s55_s17 }
  0x80   :  { %v25_v5 = vpop.permute.xlu0 %24 }
  0x81   :  { %v32_v9 = vmul.f32 %v49_v6, %v25_v5 }
  0x84   :  { %v27_v8 = vpop.permute.xlu0 %26 }
  0x85   :  { %v37_v10 = vmul.f32 %v50_v7, %v27_v8 }
  0x87   :  { %v38_v12 = vadd.f32 %v37_v10, %v32_v9 }
  0x89   :  { %v43_v13 = vadd.f32 %v51_v11, %v38_v12 }
  0x8b   :  { %44 = vst [vmem:[%s97_s3] sm:$0xf] %v43_v13 }

</bundles_post_ra>
